<compile_context>
chip_gen: v6e
topology: v6e:2x2x1
jax: 0.10.0
libtpu: 0.0.40
codegen_flags: <defaults>
</compile_context>

<pallas_src>
import functools

import jax
import jax.numpy as jnp
from jax.experimental import pallas as pl
from jax.experimental.pallas import tpu as pltpu


# ---------------------------------------------------------------------------
# Fused synthetic whisper forward (one pallas_call, grid over vocab tiles):
#   enc   = gelu(X @ W_enc + b)                      X: [B*T, D] rows
#   k, v  = enc @ Wk, enc @ Wv                       [B*T, H]
#   q     = dec @ Wq                                 [L, H] (sot ids shared per batch)
#   ctx   = softmax(q k^T / sqrt(H)) v               batched dot_generals, deferred norm
#   h     = dec + ctx                                -> persistent VMEM scratch (bf16)
#   logits[:, j*TN:(j+1)*TN] = h @ W_out[:, tile j]  per grid step
# ---------------------------------------------------------------------------
def fused_whisper_kernel(x_ref, dec_ref, w_enc_ref, b_enc_ref,
                         wq_ref, wk_ref, wv_ref, wo_ref, out_ref,
                         h_ref, *, batch):
    f32, bf16 = jnp.float32, jnp.bfloat16

    @pl.when(pl.program_id(0) == 0)
    def _compute_h():
        BT = x_ref.shape[0]
        L, H = dec_ref.shape
        T = BT // batch
        scale = 1.0 / (float(H) ** 0.5)

        # encoder: single [B*T, D] @ [D, H] matmul, no in-kernel transpose
        enc = jnp.dot(x_ref[...], w_enc_ref[...], preferred_element_type=f32)
        enc = jax.nn.gelu(enc + b_enc_ref[...], approximate=True)   # f32 elementwise
        enc_b = enc.astype(bf16)                                     # [B*T, H]

        # decoder projections: full-row matmuls (one MXU push each)
        k = jnp.dot(enc_b, wk_ref[...], preferred_element_type=f32)  # [B*T, H]
        v = jnp.dot(enc_b, wv_ref[...], preferred_element_type=f32)  # [B*T, H]
        dec = dec_ref[...]                                           # [L, H] bf16
        q = jnp.dot(dec, wq_ref[...], preferred_element_type=f32)    # [L, H]

        # batched cross-attention (q shared across batch) -------------------
        k3 = k.astype(bf16).reshape(batch, T, H)
        v3 = v.astype(bf16).reshape(batch, T, H)
        q3 = jnp.broadcast_to(q.astype(bf16)[None], (batch, L, H))

        s = jax.lax.dot_general(q3, k3, (((2,), (2,)), ((0,), (0,))),
                                preferred_element_type=f32) * scale  # [B, L, T]
        m = jnp.max(s, axis=-1, keepdims=True)
        p = jnp.exp(s - m)                                           # unnormalized
        denom = jnp.sum(p, axis=-1, keepdims=True)                   # [B, L, 1]
        ctx_un = jax.lax.dot_general(p.astype(bf16), v3,
                                     (((2,), (1,)), ((0,), (0,))),
                                     preferred_element_type=f32)     # [B, L, H]
        # deferred normalization: one EUP reciprocal + [B, L, H] multiply
        ctx = ctx_un * pl.reciprocal(denom, approx=True)

        h = dec.astype(f32)[None] + ctx                              # [B, L, H]
        # single unmasked whole-block write; persists across vocab-tile steps
        h_ref[...] = h.reshape(batch * L, H).astype(bf16)

    # one lane-dense vocab tile per grid step: [B*L, H] @ [H, TN]
    out_ref[...] = jnp.dot(h_ref[...], wo_ref[...], preferred_element_type=f32)


# ---------------------------------------------------------------------------
# SoftPromptModelWrapper.forward equivalent
# ---------------------------------------------------------------------------
def softprompt_forward(mels, params):
    """mels: [B, D, T] float32 -> logits [B, L_sot, vocab] float32."""
    B, D, T = mels.shape
    bf16 = jnp.bfloat16

    softprompt = params["softprompt"]                       # [D, V] learnable (f32)
    V = softprompt.shape[1]

    # mels = mels[:, :, :-V]; sp_mels = concat(softprompt, mels, dim=2)
    # Done in the already-transposed [B, T, D] layout so broadcast + concat +
    # bf16 cast fuse into one relayout pass (no kernel needed: pure data move).
    mels_t = jnp.transpose(mels, (0, 2, 1))                             # [B, T, D]
    sp_rows = jnp.broadcast_to(jnp.transpose(softprompt)[None], (B, V, D))
    x = jnp.concatenate([sp_rows, mels_t[:, :T - V, :]], axis=1).astype(bf16)
    x = x.reshape(B * T, D)                                             # [B*T, D]

    # _mel_to_logit: sot ids identical per batch element -> one [L, H] gather.
    sot_ids = params["sot_ids"]
    L = sot_ids.shape[0]
    dec_emb = params["tok_emb"][sot_ids]                    # [L, H] bf16 (stored bf16)

    w_enc, b_enc = params["w_enc"], params["b_enc"]         # bf16 / f32 bias
    wq, wk, wv = params["wq"], params["wk"], params["wv"]   # bf16
    w_out = params["w_out"]                                 # bf16
    H = w_enc.shape[1]
    VOCAB = w_out.shape[1]

    TN = min(VOCAB, 256)                                    # lane-dense vocab tile
    assert VOCAB % TN == 0, "vocab must be padded to a multiple of the tile"
    BT = B * T

    logits_flat = pl.pallas_call(
        functools.partial(fused_whisper_kernel, batch=B),
        out_shape=jax.ShapeDtypeStruct((B * L, VOCAB), jnp.float32),
        grid_spec=pltpu.PrefetchScalarGridSpec(
            num_scalar_prefetch=0,
            grid=(VOCAB // TN,),
            in_specs=[
                pl.BlockSpec((BT, D), lambda j: (0, 0)),    # x (resident)
                pl.BlockSpec((L, H), lambda j: (0, 0)),     # dec_emb
                pl.BlockSpec((D, H), lambda j: (0, 0)),     # w_enc
                pl.BlockSpec((1, H), lambda j: (0, 0)),     # b_enc
                pl.BlockSpec((H, H), lambda j: (0, 0)),     # wq
                pl.BlockSpec((H, H), lambda j: (0, 0)),     # wk
                pl.BlockSpec((H, H), lambda j: (0, 0)),     # wv
                # w_out streamed tile-by-tile, double-buffered
                pl.BlockSpec((H, TN), lambda j: (0, j),
                             pipeline_mode=pl.Buffered(2)),
            ],
            out_specs=pl.BlockSpec((B * L, TN), lambda j: (0, j)),
            scratch_shapes=[pltpu.VMEM((B * L, H), jnp.bfloat16)],
        ),
        # "arbitrary": h scratch is computed at j==0 and reused by every tile
        # on the same core; a "parallel" split would starve the second TC.
        compiler_params=pltpu.CompilerParams(
            dimension_semantics=("arbitrary",)),
    )(x, dec_emb, w_enc, b_enc, wq, wk, wv, w_out)

    return logits_flat.reshape(B, L, VOCAB)


# ---------------------------------------------------------------------------
# Pure-JAX reference (same bf16 cast points) for correctness checking.
# ---------------------------------------------------------------------------
def reference_forward(mels, params):
    B, D, T = mels.shape
    bf16, f32 = jnp.bfloat16, jnp.float32
    sp = params["softprompt"]
    V = sp.shape[1]
    sp_mels = jnp.concatenate(
        [jnp.broadcast_to(sp[None], (B, D, V)), mels[:, :, :T - V]], axis=2)
    x = jnp.transpose(sp_mels, (0, 2, 1)).astype(bf16)               # [B, T, D]
    enc = jnp.einsum("btd,dh->bth", x, params["w_enc"],
                     preferred_element_type=f32) + params["b_enc"]
    enc = jax.nn.gelu(enc, approximate=True).astype(bf16)            # [B, T, H]
    dec = params["tok_emb"][params["sot_ids"]]                       # [L, H] bf16
    H = dec.shape[-1]
    q = jnp.dot(dec, params["wq"], preferred_element_type=f32).astype(bf16)
    k = jnp.einsum("bth,hk->btk", enc, params["wk"],
                   preferred_element_type=f32).astype(bf16)
    v = jnp.einsum("bth,hk->btk", enc, params["wv"],
                   preferred_element_type=f32).astype(bf16)
    s = jnp.einsum("lh,bth->blt", q, k,
                   preferred_element_type=f32) / jnp.sqrt(jnp.float32(H))
    p = jax.nn.softmax(s, axis=-1)
    ctx = jnp.einsum("blt,bth->blh", p.astype(bf16), v,
                     preferred_element_type=f32)
    h = (dec.astype(f32)[None] + ctx).astype(bf16)
    return jnp.einsum("blh,hv->blv", h, params["w_out"],
                      preferred_element_type=f32)


def make_params(key, *, num_dim, num_vectors, hidden, vocab):
    ks = jax.random.split(key, 8)
    bf16 = jnp.bfloat16
    # Weights cast to bf16 ONCE at init (not per-call inside the jitted wrapper).
    return {
        # nn.Parameter(torch.rand(num_dim, num_vectors)) -> uniform [0, 1)
        "softprompt": jax.random.uniform(ks[0], (num_dim, num_vectors),
                                         dtype=jnp.float32),
        "w_enc": (0.1 * jax.random.normal(ks[1], (num_dim, hidden),
                                          jnp.float32)).astype(bf16),
        "b_enc": 0.1 * jax.random.normal(ks[2], (1, hidden), jnp.float32),
        "wq": (0.1 * jax.random.normal(ks[3], (hidden, hidden),
                                       jnp.float32)).astype(bf16),
        "wk": (0.1 * jax.random.normal(ks[4], (hidden, hidden),
                                       jnp.float32)).astype(bf16),
        "wv": (0.1 * jax.random.normal(ks[5], (hidden, hidden),
                                       jnp.float32)).astype(bf16),
        "w_out": (0.1 * jax.random.normal(ks[6], (hidden, vocab),
                                          jnp.float32)).astype(bf16),
        "tok_emb": (0.1 * jax.random.normal(ks[7], (vocab, hidden),
                                            jnp.float32)).astype(bf16),
        # tokenizer.sot_sequence_including_notimestamps stand-in
        "sot_ids": jnp.array([1, 2, 3, 4], dtype=jnp.int32),
    }


if __name__ == "__main__":
    B, D, T = 2, 80, 64          # batch, n_mels, frames
    V = 8                        # num_vectors (softprompt length)
    H, VOCAB = 128, 512          # lane-dense hidden / vocab for the synthetic model

    key = jax.random.PRNGKey(0)
    k_mel, k_par = jax.random.split(key)
    mels = jax.random.normal(k_mel, (B, D, T), dtype=jnp.float32)
    params = make_params(k_par, num_dim=D, num_vectors=V, hidden=H, vocab=VOCAB)

    fwd = jax.jit(softprompt_forward)
    logits = jax.block_until_ready(fwd(mels, params))
    ref = jax.block_until_ready(reference_forward(mels, params))

    L = params["sot_ids"].shape[0]
    assert logits.shape == (B, L, VOCAB)
    assert jnp.all(jnp.isfinite(logits))
    # bf16 MXU precision contract (weights/activations bf16, f32 accumulation)
    assert jnp.allclose(logits, ref, rtol=2.5e-2, atol=1e-2), (
        "fused kernel mismatch vs pure-JAX reference")
    print("KERNEL_OK")
</pallas_src>

<mosaic_0001>
module attributes {stable_mosaic.version = 11 : i64} {
  func.func @fused_whisper_kernel(%arg0: i32, %arg1: memref<128x80xbf16, #tpu.memory_space<vmem>>, %arg2: memref<4x128xbf16, #tpu.memory_space<vmem>>, %arg3: memref<80x128xbf16, #tpu.memory_space<vmem>>, %arg4: memref<1x128xf32, #tpu.memory_space<vmem>>, %arg5: memref<128x128xbf16, #tpu.memory_space<vmem>>, %arg6: memref<128x128xbf16, #tpu.memory_space<vmem>>, %arg7: memref<128x128xbf16, #tpu.memory_space<vmem>>, %arg8: memref<128x256xbf16, #tpu.memory_space<vmem>>, %arg9: memref<8x256xf32, #tpu.memory_space<vmem>>, %arg10: memref<8x128xbf16, #tpu.memory_space<vmem>>) attributes {dimension_semantics = [#tpu.dimension_semantics<arbitrary>], iteration_bounds = array<i64: 2>, scalar_prefetch = 0 : i64, scratch_operands = 1 : i64, tpu.core_type = #tpu.core_type<tc>, window_params = [{pipeline_mode = #tpu.pipeline_mode<synchronous>, transform_indices = @transform_0, window_bounds = array<i64: 128, 80>}, {pipeline_mode = #tpu.pipeline_mode<synchronous>, transform_indices = @transform_1, window_bounds = array<i64: 4, 128>}, {pipeline_mode = #tpu.pipeline_mode<synchronous>, transform_indices = @transform_2, window_bounds = array<i64: 80, 128>}, {pipeline_mode = #tpu.pipeline_mode<synchronous>, transform_indices = @transform_3, window_bounds = array<i64: 1, 128>}, {pipeline_mode = #tpu.pipeline_mode<synchronous>, transform_indices = @transform_4, window_bounds = array<i64: 128, 128>}, {pipeline_mode = #tpu.pipeline_mode<synchronous>, transform_indices = @transform_5, window_bounds = array<i64: 128, 128>}, {pipeline_mode = #tpu.pipeline_mode<synchronous>, transform_indices = @transform_6, window_bounds = array<i64: 128, 128>}, {pipeline_mode = #tpu.pipeline_mode<double_buffered>, transform_indices = @transform_7, window_bounds = array<i64: 128, 256>}, {transform_indices = @transform_8, window_bounds = array<i64: 8, 256>}]} {
    %c0_i32 = arith.constant 0 : i32
    %0 = arith.cmpi eq, %arg0, %c0_i32 : i32
    %1 = arith.extui %0 : i1 to i32
    %c0_i32_0 = arith.constant 0 : i32
    %2 = arith.cmpi ne, %1, %c0_i32_0 : i32
    scf.if %2 {
      %c0_6 = arith.constant 0 : index
      %c0_7 = arith.constant 0 : index
      %7 = vector.load %arg1[%c0_6, %c0_7] : memref<128x80xbf16, #tpu.memory_space<vmem>>, vector<128x80xbf16>
      %c0_8 = arith.constant 0 : index
      %c0_9 = arith.constant 0 : index
      %8 = vector.load %arg3[%c0_8, %c0_9] : memref<80x128xbf16, #tpu.memory_space<vmem>>, vector<80x128xbf16>
      %cst_10 = arith.constant dense<0.000000e+00> : vector<128x128xf32>
      %9 = tpu.matmul %7, %8, %cst_10 {dimension_numbers = #tpu.dot_dimension_numbers<[1], [0], [0], [1], [0, 0, 1, 1], [], []>} : vector<128x80xbf16>, vector<80x128xbf16>, vector<128x128xf32> -> vector<128x128xf32>
      %c0_11 = arith.constant 0 : index
      %c0_12 = arith.constant 0 : index
      %10 = vector.load %arg4[%c0_11, %c0_12] : memref<1x128xf32, #tpu.memory_space<vmem>>, vector<1x128xf32>
      %11 = vector.broadcast %10 : vector<1x128xf32> to vector<128x128xf32>
      %12 = arith.addf %9, %11 : vector<128x128xf32>
      %13 = arith.mulf %12, %12 : vector<128x128xf32>
      %14 = arith.mulf %12, %13 : vector<128x128xf32>
      %cst_13 = arith.constant 4.471500e-02 : f32
      %15 = vector.broadcast %cst_13 : f32 to vector<128x128xf32>
      %16 = arith.mulf %15, %14 : vector<128x128xf32>
      %17 = arith.addf %12, %16 : vector<128x128xf32>
      %cst_14 = arith.constant 0.797884583 : f32
      %18 = vector.broadcast %cst_14 : f32 to vector<128x128xf32>
      %19 = arith.mulf %18, %17 : vector<128x128xf32>
      %20 = math.tanh %19 : vector<128x128xf32>
      %cst_15 = arith.constant 1.000000e+00 : f32
      %21 = vector.broadcast %cst_15 : f32 to vector<128x128xf32>
      %22 = arith.addf %21, %20 : vector<128x128xf32>
      %cst_16 = arith.constant 5.000000e-01 : f32
      %23 = vector.broadcast %cst_16 : f32 to vector<128x128xf32>
      %24 = arith.mulf %23, %22 : vector<128x128xf32>
      %25 = arith.mulf %12, %24 : vector<128x128xf32>
      %26 = arith.truncf %25 : vector<128x128xf32> to vector<128x128xbf16>
      %c0_17 = arith.constant 0 : index
      %c0_18 = arith.constant 0 : index
      %27 = vector.load %arg6[%c0_17, %c0_18] : memref<128x128xbf16, #tpu.memory_space<vmem>>, vector<128x128xbf16>
      %cst_19 = arith.constant dense<0.000000e+00> : vector<128x128xf32>
      %28 = tpu.matmul %26, %27, %cst_19 {dimension_numbers = #tpu.dot_dimension_numbers<[1], [0], [0], [1], [0, 0, 1, 1], [], []>} : vector<128x128xbf16>, vector<128x128xbf16>, vector<128x128xf32> -> vector<128x128xf32>
      %c0_20 = arith.constant 0 : index
      %c0_21 = arith.constant 0 : index
      %29 = vector.load %arg7[%c0_20, %c0_21] : memref<128x128xbf16, #tpu.memory_space<vmem>>, vector<128x128xbf16>
      %cst_22 = arith.constant dense<0.000000e+00> : vector<128x128xf32>
      %30 = tpu.matmul %26, %29, %cst_22 {dimension_numbers = #tpu.dot_dimension_numbers<[1], [0], [0], [1], [0, 0, 1, 1], [], []>} : vector<128x128xbf16>, vector<128x128xbf16>, vector<128x128xf32> -> vector<128x128xf32>
      %c0_23 = arith.constant 0 : index
      %c0_24 = arith.constant 0 : index
      %31 = vector.load %arg2[%c0_23, %c0_24] : memref<4x128xbf16, #tpu.memory_space<vmem>>, vector<4x128xbf16>
      %c0_25 = arith.constant 0 : index
      %c0_26 = arith.constant 0 : index
      %32 = vector.load %arg5[%c0_25, %c0_26] : memref<128x128xbf16, #tpu.memory_space<vmem>>, vector<128x128xbf16>
      %cst_27 = arith.constant dense<0.000000e+00> : vector<4x128xf32>
      %33 = tpu.matmul %31, %32, %cst_27 {dimension_numbers = #tpu.dot_dimension_numbers<[1], [0], [0], [1], [0, 0, 1, 1], [], []>} : vector<4x128xbf16>, vector<128x128xbf16>, vector<4x128xf32> -> vector<4x128xf32>
      %34 = arith.truncf %28 : vector<128x128xf32> to vector<128x128xbf16>
      %35 = vector.shape_cast %34 : vector<128x128xbf16> to vector<2x64x128xbf16>
      %36 = arith.truncf %30 : vector<128x128xf32> to vector<128x128xbf16>
      %37 = vector.shape_cast %36 : vector<128x128xbf16> to vector<2x64x128xbf16>
      %38 = arith.truncf %33 : vector<4x128xf32> to vector<4x128xbf16>
      %39 = vector.shape_cast %38 : vector<4x128xbf16> to vector<1x4x128xbf16>
      %40 = vector.shape_cast %39 : vector<1x4x128xbf16> to vector<1x4x128xbf16>
      %41 = vector.broadcast %40 : vector<1x4x128xbf16> to vector<2x4x128xbf16>
      %cst_28 = arith.constant dense<0.000000e+00> : vector<2x4x64xf32>
      %42 = tpu.matmul %41, %35, %cst_28 {dimension_numbers = #tpu.dot_dimension_numbers<[2], [2], [1], [1], [0, 0, 0, 1, 1, 1], [0], [0]>} : vector<2x4x128xbf16>, vector<2x64x128xbf16>, vector<2x4x64xf32> -> vector<2x4x64xf32>
      %cst_29 = arith.constant 0.0883883461 : f32
      %43 = vector.broadcast %cst_29 : f32 to vector<2x4x64xf32>
      %44 = arith.mulf %42, %43 : vector<2x4x64xf32>
      %cst_30 = arith.constant dense<0xFF800000> : vector<2x4xf32>
      %45 = vector.multi_reduction <maximumf>, %44, %cst_30 [2] : vector<2x4x64xf32> to vector<2x4xf32>
      %46 = vector.shape_cast %45 : vector<2x4xf32> to vector<2x4x1xf32>
      %47 = vector.broadcast %46 : vector<2x4x1xf32> to vector<2x4x64xf32>
      %48 = arith.subf %44, %47 : vector<2x4x64xf32>
      %49 = math.exp %48 : vector<2x4x64xf32>
      %cst_31 = arith.constant dense<0.000000e+00> : vector<2x4xf32>
      %50 = vector.multi_reduction <add>, %49, %cst_31 [2] : vector<2x4x64xf32> to vector<2x4xf32>
      %51 = vector.shape_cast %50 : vector<2x4xf32> to vector<2x4x1xf32>
      %52 = arith.truncf %49 : vector<2x4x64xf32> to vector<2x4x64xbf16>
      %cst_32 = arith.constant dense<0.000000e+00> : vector<2x4x128xf32>
      %53 = tpu.matmul %52, %37, %cst_32 {dimension_numbers = #tpu.dot_dimension_numbers<[2], [1], [1], [2], [0, 0, 0, 1, 1, 2], [0], [0]>} : vector<2x4x64xbf16>, vector<2x64x128xbf16>, vector<2x4x128xf32> -> vector<2x4x128xf32>
      %54 = tpu.reciprocal %51 {approx = true} : vector<2x4x1xf32> -> vector<2x4x1xf32>
      %55 = vector.broadcast %54 : vector<2x4x1xf32> to vector<2x4x128xf32>
      %56 = arith.mulf %53, %55 : vector<2x4x128xf32>
      %57 = arith.extf %31 : vector<4x128xbf16> to vector<4x128xf32>
      %58 = vector.shape_cast %57 : vector<4x128xf32> to vector<1x4x128xf32>
      %59 = vector.broadcast %58 : vector<1x4x128xf32> to vector<2x4x128xf32>
      %60 = arith.addf %59, %56 : vector<2x4x128xf32>
      %61 = vector.shape_cast %60 : vector<2x4x128xf32> to vector<8x128xf32>
      %62 = arith.truncf %61 : vector<8x128xf32> to vector<8x128xbf16>
      %c0_33 = arith.constant 0 : index
      %c0_34 = arith.constant 0 : index
      %63 = vector.load %arg10[%c0_33, %c0_34] : memref<8x128xbf16, #tpu.memory_space<vmem>>, vector<8x128xbf16>
      tpu.vector_store %arg10[%c0_33, %c0_34], %62 {strides = array<i32>} : memref<8x128xbf16, #tpu.memory_space<vmem>>, vector<8x128xbf16>,
    } else {
    }
    %c0 = arith.constant 0 : index
    %c0_1 = arith.constant 0 : index
    %3 = vector.load %arg10[%c0, %c0_1] : memref<8x128xbf16, #tpu.memory_space<vmem>>, vector<8x128xbf16>
    %c0_2 = arith.constant 0 : index
    %c0_3 = arith.constant 0 : index
    %4 = vector.load %arg8[%c0_2, %c0_3] : memref<128x256xbf16, #tpu.memory_space<vmem>>, vector<128x256xbf16>
    %cst = arith.constant dense<0.000000e+00> : vector<8x256xf32>
    %5 = tpu.matmul %3, %4, %cst {dimension_numbers = #tpu.dot_dimension_numbers<[1], [0], [0], [1], [0, 0, 1, 1], [], []>} : vector<8x128xbf16>, vector<128x256xbf16>, vector<8x256xf32> -> vector<8x256xf32>
    %c0_4 = arith.constant 0 : index
    %c0_5 = arith.constant 0 : index
    %6 = vector.load %arg9[%c0_4, %c0_5] : memref<8x256xf32, #tpu.memory_space<vmem>>, vector<8x256xf32>
    tpu.vector_store %arg9[%c0_4, %c0_5], %5 {strides = array<i32>} : memref<8x256xf32, #tpu.memory_space<vmem>>, vector<8x256xf32>,
    return
  }
  func.func @transform_0(%arg0: i32) -> (i32, i32) {
    %c0_i32 = arith.constant 0 : i32
    %c0_i32_0 = arith.constant 0 : i32
    %c0_i32_1 = arith.constant 0 : i32
    return %c0_i32, %c0_i32_0 : i32, i32
  }
  func.func @transform_1(%arg0: i32) -> (i32, i32) {
    %c0_i32 = arith.constant 0 : i32
    %c0_i32_0 = arith.constant 0 : i32
    %c0_i32_1 = arith.constant 0 : i32
    return %c0_i32, %c0_i32_0 : i32, i32
  }
  func.func @transform_2(%arg0: i32) -> (i32, i32) {
    %c0_i32 = arith.constant 0 : i32
    %c0_i32_0 = arith.constant 0 : i32
    %c0_i32_1 = arith.constant 0 : i32
    return %c0_i32, %c0_i32_0 : i32, i32
  }
  func.func @transform_3(%arg0: i32) -> (i32, i32) {
    %c0_i32 = arith.constant 0 : i32
    %c0_i32_0 = arith.constant 0 : i32
    %c0_i32_1 = arith.constant 0 : i32
    return %c0_i32, %c0_i32_0 : i32, i32
  }
  func.func @transform_4(%arg0: i32) -> (i32, i32) {
    %c0_i32 = arith.constant 0 : i32
    %c0_i32_0 = arith.constant 0 : i32
    %c0_i32_1 = arith.constant 0 : i32
    return %c0_i32, %c0_i32_0 : i32, i32
  }
  func.func @transform_5(%arg0: i32) -> (i32, i32) {
    %c0_i32 = arith.constant 0 : i32
    %c0_i32_0 = arith.constant 0 : i32
    %c0_i32_1 = arith.constant 0 : i32
    return %c0_i32, %c0_i32_0 : i32, i32
  }
  func.func @transform_6(%arg0: i32) -> (i32, i32) {
    %c0_i32 = arith.constant 0 : i32
    %c0_i32_0 = arith.constant 0 : i32
    %c0_i32_1 = arith.constant 0 : i32
    return %c0_i32, %c0_i32_0 : i32, i32
  }
  func.func @transform_7(%arg0: i32) -> (i32, i32) {
    %c0_i32 = arith.constant 0 : i32
    %c0_i32_0 = arith.constant 0 : i32
    return %c0_i32, %arg0 : i32, i32
  }
  func.func @transform_8(%arg0: i32) -> (i32, i32) {
    %c0_i32 = arith.constant 0 : i32
    %c0_i32_0 = arith.constant 0 : i32
    return %c0_i32, %arg0 : i32, i32
  }
}

</mosaic_0001>

<bundles_post_ra>
// kernel: softprompt_forward.1
= control target key start
LH: loop header
LB: loop body
LE: loop exit
PB: predicated region body
PF: predicated region fallthrough
CT: control target
= control target key end

     0   :  { %s2146_s27 = smov 0   ;;  %s2148_s28 = smov 0   ;;  %s2543_s0 = inlined_call_operand.vmem [shape: bf16[128,80], index: 0, kind: input, shape index: {}]   ;;  %s2544_s1 = inlined_call_operand.vmem [shape: bf16[4,128], index: 1, kind: input, shape index: {}]   ;;  %s2545_s2 = inlined_call_operand.vmem [shape: bf16[80,128], index: 2, kind: input, shape index: {}]   ;;  %s2546_s3 = inlined_call_operand.vmem [shape: f32[1,128], index: 3, kind: input, shape index: {}]   ;;  %s2547_s4 = inlined_call_operand.vmem [shape: bf16[128,128], index: 4, kind: input, shape index: {}]   ;;  %s2548_s5 = inlined_call_operand.vmem [shape: bf16[128,128], index: 5, kind: input, shape index: {}]   ;;  %s2549_s6 = inlined_call_operand.vmem [shape: bf16[128,128], index: 6, kind: input, shape index: {}]   ;;  %s2550_s7 = inlined_call_operand.vmem [shape: bf16[128,512], index: 7, kind: input, shape index: {}]   ;;  %s2551_s8 = inlined_call_operand.vmem [shape: f32[8,512], index: 8, kind: output, shape index: {}]  }
   0x1   :  { %s2150_s29 = smov 0  }
   0x2 LB: > { %s1635_s30 = sadd.s32 4294967295, %s2096_s29   ;;  %s2163_s9 = sadd.s32 1, %s2096_s29   ;;  %s2096_s29 = sphi %s2150_s29, %s2554_s29   ;;  %s2092_s28 = sphi %s2148_s28, %s2553_s28   ;;  %s2088_s27 = sphi %s2146_s27, %s2552_s27  }
   0x3   : > { %s169_s10 = ssub.s32 %s2096_s29, %s2163_s9  ;;  %s172_s11 = sadd.s32 1, %s2092_s28 }
   0x4   : > { %p170_p0 = scmp.eq.s32.totalorder %s169_s10, 0  ;;  %p179_p1 = scmp.ne.s32.totalorder %s2092_s28, %s2088_s27 }
   0x5   : > { %p180_p2 = scmp.eq.s32.totalorder %s2096_s29, 0  ;;  %p1638_p4 = scmp.ge.s32.totalorder %s2096_s29, 2 }
   0x6   : > { %s2172_s12 = scalar_select %p170_p0, %s2092_s28, %s172_s11  }
   0x7   : > { %p181_p3 = por %p180_p2, %p179_p1  ;;  %252 = sbr.rel (%p1638_p4) target bundleno = 24 (0x18), region = 44 }
   0xc   : > { %255 = sbr.rel (!%p181_p3) target bundleno = 24 (0x18), region = 48  ;;  %s257_s13 = sand.u32 (%p181_p3), 1, %s2092_s28  }
   0xd   : > { %s1713_s14 = sshll.u32 (%p181_p3), %s2096_s29, 3  ;;  %s1639_s15 = sshll.u32 (%p181_p3), %s257_s13, 7 }
   0xe   : > { %s2180_s18 = scalar_lea.vmem (%p181_p3), %s2550_s7, %s1713_s14  ;;  %s259_s19 = scalar_lea.vmem (%p181_p3), [#allocation3], %s1639_s15 }
   0xf   : > { %v321_v0 = vld [vmem:[%s2180_s18] sm:$0xff] (%p181_p3)  ;;  %v323_v1 = vld [vmem:[%s2180_s18 + $0x10] sm:$0xff] (%p181_p3) }
  0x10   : > { %v325_v2 = vld [vmem:[%s2180_s18 + $0x20] sm:$0xff] (%p181_p3)  ;;  %322 = vst [vmem:[%s259_s19] sm:$0xff] (%p181_p3), %v321_v0  ;;  %324 = vst [vmem:[%s259_s19 + $0x8] sm:$0xff] (%p181_p3), %v323_v1  ;;  %v327_v3 = vld [vmem:[%s2180_s18 + $0x30] sm:$0xff] (%p181_p3) }
  0x11   : > { %326 = vst [vmem:[%s259_s19 + $0x10] sm:$0xff] %v325_v2  ;;  %v329_v4 = vld [vmem:[%s2180_s18 + $0x40] sm:$0xff]  ;;  %v331_v5 = vld [vmem:[%s2180_s18 + $0x50] sm:$0xff]  ;;  %328 = vst [vmem:[%s259_s19 + $0x18] sm:$0xff] %v327_v3 }
  0x12   : > { %330 = vst [vmem:[%s259_s19 + $0x20] sm:$0xff] %v329_v4  ;;  %332 = vst [vmem:[%s259_s19 + $0x28] sm:$0xff] %v331_v5  ;;  %v333_v6 = vld [vmem:[%s2180_s18 + $0x60] sm:$0xff]  ;;  %v335_v7 = vld [vmem:[%s2180_s18 + $0x70] sm:$0xff] }
  0x13   : > { %v337_v8 = vld [vmem:[%s2180_s18 + $0x80] sm:$0xff]  ;;  %334 = vst [vmem:[%s259_s19 + $0x30] sm:$0xff] %v333_v6  ;;  %336 = vst [vmem:[%s259_s19 + $0x38] sm:$0xff] %v335_v7  ;;  %v339_v9 = vld [vmem:[%s2180_s18 + $0x90] sm:$0xff] }
  0x14   : > { %338 = vst [vmem:[%s259_s19 + $0x40] sm:$0xff] %v337_v8  ;;  %v341_v10 = vld [vmem:[%s2180_s18 + $0xa0] sm:$0xff]  ;;  %v343_v11 = vld [vmem:[%s2180_s18 + $0xb0] sm:$0xff]  ;;  %340 = vst [vmem:[%s259_s19 + $0x48] sm:$0xff] %v339_v9 }
  0x15   : > { %342 = vst [vmem:[%s259_s19 + $0x50] sm:$0xff] %v341_v10  ;;  %344 = vst [vmem:[%s259_s19 + $0x58] sm:$0xff] %v343_v11  ;;  %v345_v12 = vld [vmem:[%s2180_s18 + $0xc0] sm:$0xff]  ;;  %v347_v13 = vld [vmem:[%s2180_s18 + $0xd0] sm:$0xff] }
  0x16   : > { %v349_v14 = vld [vmem:[%s2180_s18 + $0xe0] sm:$0xff]  ;;  %346 = vst [vmem:[%s259_s19 + $0x60] sm:$0xff] %v345_v12  ;;  %348 = vst [vmem:[%s259_s19 + $0x68] sm:$0xff] %v347_v13  ;;  %v351_v15 = vld [vmem:[%s2180_s18 + $0xf0] sm:$0xff] }
  0x17   : > { %350 = vst [vmem:[%s259_s19 + $0x70] sm:$0xff] %v349_v14  ;;  %352 = vst [vmem:[%s259_s19 + $0x78] sm:$0xff] %v351_v15 }
  0x18 PF: > { %p1642_p5 = scmp.ge.s32.totalorder %s2096_s29, 1  ;;  %p357_p6 = scmp.lt.s32.totalorder %s2096_s29, 3 }
  0x1a   : > { %p358_p7 = pnand %p1642_p5, %p357_p6 }
  0x1b   : > { %s364_s20 = sand.u32 (!%p358_p7), 1, %s2088_s27   ;;  %s1644_s21 = sshll.u32 (!%p358_p7), %s1635_s30, 1 }
  0x1c   : > { %361 = sbr.rel (%p358_p7) target bundleno = 1336 (0x538), region = 86  ;;  %s1643_s22 = sshll.u32 (!%p358_p7), %s364_s20, 7 }
  0x1d   : > { %p399_p8 = scmp.lt.s32.totalorder (!%p358_p7), %s1644_s21, 3  ;;  %s2208_s10 = scalar_lea.vmem (!%p358_p7), [#allocation3], %s1643_s22 }
  0x1e   : > { %p1646_p9 = scmp.ne.s32.totalorder (!%p358_p7), %s1635_s30, 0 }
  0x21   : > { %s2556_s21 = smov (!%p399_p8, %s1644_s21), 3  ;;  %408 = sbr.rel (%p1646_p9) target bundleno = 1104 (0x450), region = 94 }
  0x22   : > { %s1645_s23 = sshll.u32 %s2556_s21, 3 }
  0x23   : > { %s2206_s26 = scalar_lea.vmem %s2551_s8, %s1645_s23 }
  0x26   : > { %v1973_v16 = vld [vmem:[%s2545_s2 + $0x20] sm:$0xff]   ;;  %v1974_v17 = vld [vmem:[%s2545_s2 + $0x18] sm:$0xff]   ;;  %v1975_v18 = vld [vmem:[%s2545_s2 + $0x10] sm:$0xff]   ;;  %vm512_vm0 = vcmask 654336   ;;  %v2098_v45 = vmov 0.0   ;;  %vm2099_vm1 = vmmov 0  }
  0x27   : > { %1788 = vmatprep.subr.bf16.mxu0 %v1973_v16  ;;  %v1978_v19 = vld [vmem:[%s2543_s0] sm:$0xff]   ;;  %v1976_v20 = vld [vmem:[%s2545_s2 + $0x8] sm:$0xff]   ;;  %v1980_v23 = vld [vmem:[%s2543_s0 + $0x10] sm:$0xff]   ;;  %vm1312_vm2 = vcmask 519168   ;;  %vm1333_vm3 = vcmask 523264  }
  0x28   : > { %1789 = vmatpush3.bf16.msra.mxu0 %v1973_v16  ;;  %1798 = vmatprep.mubr.msk.bf16.mxu0 %vm512_vm0, %v1978_v19  ;;  %v1977_v21 = vld [vmem:[%s2545_s2] sm:$0xff]   ;;  %v1979_v22 = vld [vmem:[%s2543_s0 + $0x8] sm:$0xff]   ;;  %v1981_v24 = vld [vmem:[%s2543_s0 + $0x18] sm:$0xff]  }
  0x29   : > { %1790 = vmatprep.subr.bf16.mxu0 %v1974_v17  ;;  %v1982_v25 = vld [vmem:[%s2543_s0 + $0x20] sm:$0xff]   ;;  %v1983_v26 = vld [vmem:[%s2543_s0 + $0x28] sm:$0xff]   ;;  %v1984_v27 = vld [vmem:[%s2543_s0 + $0x30] sm:$0xff]  }
  0x2a   : > { %v1985_v28 = vld [vmem:[%s2543_s0 + $0x38] sm:$0xff]   ;;  %v1988_v31 = vld [vmem:[%s2548_s5 + $0x30] sm:$0xff]   ;;  %v1990_v33 = vld [vmem:[%s2548_s5 + $0x28] sm:$0xff]  }
  0x2b   : > { %v1986_v29 = vld [vmem:[%s2548_s5 + $0x38] sm:$0xff]   ;;  %v1989_v32 = vld [vmem:[%s2549_s6 + $0x30] sm:$0xff]   ;;  %v1991_v34 = vld [vmem:[%s2549_s6 + $0x28] sm:$0xff]  }
  0x2c   : > { %1791 = vmatpush3.bf16.msra.mxu0 %v1974_v17  ;;  %v1987_v30 = vld [vmem:[%s2549_s6 + $0x38] sm:$0xff]   ;;  %1814 = vmatprep.subr.bf16.mxu1 %v1986_v29  ;;  %v1992_v35 = vld [vmem:[%s2548_s5 + $0x20] sm:$0xff]   ;;  %v1996_v39 = vld [vmem:[%s2548_s5 + $0x10] sm:$0xff]  }
  0x2d   : > { %1792 = vmatprep.subr.bf16.mxu0 %v1975_v18  ;;  %1815 = vmatpush3.bf16.msra.mxu1 %v1986_v29  ;;  %v1993_v36 = vld [vmem:[%s2549_s6 + $0x20] sm:$0xff]   ;;  %v1994_v37 = vld [vmem:[%s2548_s5 + $0x18] sm:$0xff]   ;;  %v1997_v40 = vld [vmem:[%s2549_s6 + $0x10] sm:$0xff]  }
  0x2e   : > { %1816 = vmatprep.subr.bf16.mxu1 %v1988_v31  ;;  %v1995_v38 = vld [vmem:[%s2549_s6 + $0x18] sm:$0xff]   ;;  %v1998_v41 = vld [vmem:[%s2548_s5 + $0x8] sm:$0xff]   ;;  %v2000_v43 = vld [vmem:[%s2548_s5] sm:$0xff]  }
  0x2f   : > { %v1999_v42 = vld [vmem:[%s2549_s6 + $0x8] sm:$0xff]   ;;  %v2001_v44 = vld [vmem:[%s2549_s6] sm:$0xff]  }
  0x30   : > { %1793 = vmatpush3.bf16.msra.mxu0 %v1975_v18  ;;  %v2312_v46 = vld [vmem:[%s2546_s3] ss:$0 sm:$0xff] }
  0x31   : > { %1794 = vmatprep.subr.bf16.mxu0 %v1976_v20  ;;  %1817 = vmatpush3.bf16.msra.mxu1 %v1988_v31 }
  0x32   : > { %1818 = vmatprep.subr.bf16.mxu1 %v1990_v33 }
  0x34   : > { %1795 = vmatpush3.bf16.msra.mxu0 %v1976_v20 }
  0x35   : > { %1796 = vmatprep.subr.bf16.mxu0 %v1977_v21  ;;  %1819 = vmatpush3.bf16.msra.mxu1 %v1990_v33 }
  0x36   : > { %1820 = vmatprep.subr.bf16.mxu1 %v1992_v35 }
  0x38   : > { %1797 = vmatpush3.bf16.msra.mxu0 %v1977_v21 }
  0x39   : > { %1846 = vmatprep.subr.bf16.mxu0 %v1987_v30  ;;  %1821 = vmatpush3.bf16.msra.mxu1 %v1992_v35 }
  0x3a   : > { %1822 = vmatprep.subr.bf16.mxu1 %v1994_v37 }
  0x3b   : > { %1799 = vmatmul.mubr.msk.bf16.vlgmr.msra.gmra.mxu0 %vm512_vm0, %v1979_v22 }
  0x3c   : > { %1802 = vmatprep.mubr.msk.bf16.mxu0 %vm512_vm0, %v1980_v23  ;;  %1847 = vmatpush3.bf16.msra.mxu0 %v1987_v30 }
  0x3d   : > { %1848 = vmatprep.subr.bf16.mxu0 %v1989_v32  ;;  %1823 = vmatpush3.bf16.msra.mxu1 %v1994_v37 }
  0x3e   : > { %1824 = vmatprep.subr.bf16.mxu1 %v1996_v39 }
  0x40   : > { %1849 = vmatpush3.bf16.msra.mxu0 %v1989_v32 }
  0x41   : > { %1850 = vmatprep.subr.bf16.mxu0 %v1991_v34  ;;  %1825 = vmatpush3.bf16.msra.mxu1 %v1996_v39 }
  0x42   : > { %1826 = vmatprep.subr.bf16.mxu1 %v1998_v41 }
  0x43   : > { %1803 = vmatmul.mubr.msk.bf16.gmra.mxu0 %vm512_vm0, %v1981_v24 }
  0x44   : > { %1806 = vmatprep.mubr.msk.bf16.mxu0 %vm512_vm0, %v1982_v25  ;;  %1851 = vmatpush3.bf16.msra.mxu0 %v1991_v34 }
  0x45   : > { %1852 = vmatprep.subr.bf16.mxu0 %v1993_v36  ;;  %1827 = vmatpush3.bf16.msra.mxu1 %v1998_v41 }
  0x46   : > { %1828 = vmatprep.subr.bf16.mxu1 %v2000_v43 }
  0x48   : > { %1853 = vmatpush3.bf16.msra.mxu0 %v1993_v36 }
  0x49   : > { %1854 = vmatprep.subr.bf16.mxu0 %v1995_v38  ;;  %1829 = vmatpush3.bf16.msra.mxu1 %v2000_v43 }
  0x4a   : > { %1878 = vmatprep.subr.bf16.mxu1 %v2098_v45 }
  0x4b   : > { %1807 = vmatmul.mubr.msk.bf16.gmra.mxu0 %vm512_vm0, %v1983_v26 }
  0x4c   : > { %1810 = vmatprep.mubr.msk.bf16.mxu0 %vm512_vm0, %v1984_v27  ;;  %1855 = vmatpush3.bf16.msra.mxu0 %v1995_v38 }
  0x4d   : > { %1856 = vmatprep.subr.bf16.mxu0 %v1997_v40 }
  0x50   : > { %1857 = vmatpush3.bf16.msra.mxu0 %v1997_v40 }
  0x51   : > { %1858 = vmatprep.subr.bf16.mxu0 %v1999_v42 }
  0x53   : > { %1811 = vmatmul.mubr.msk.bf16.gmra.mxu0 %vm512_vm0, %v1985_v28 }
  0x54   : > { %1859 = vmatpush3.bf16.msra.mxu0 %v1999_v42 }
  0x55   : > { %1860 = vmatprep.subr.bf16.mxu0 %v2001_v44 }
  0x58   : > { %1861 = vmatpush3.bf16.msra.mxu0 %v2001_v44 }
  0x59   : > { %1898 = vmatprep.subr.bf16.mxu0 %v2098_v45 }
  0xfb   : > { %v1800_v47 = vpop.f32.mrf.mxu0 }
  0xfc   : > { %v2315_v48 = vadd.f32 %v1800_v47, %v2312_v46 }
  0xfd   : > { %v571_v49 = vpop.f32.mrf.mxu0 }
  0xfe   : > { %v636_v50 = vmul.f32 %v2315_v48, %v2315_v48  ;;  %v2320_v51 = vadd.f32 %v2312_v46, %v571_v49 }
  0xff   : > { %v1801_v52 = vpop.f32.mrf.mxu0 }
 0x100   : > { %v652_v53 = vmul.f32 %v636_v50, %v2315_v48  ;;  %v634_v54 = vmul.f32 %v2320_v51, %v2320_v51  ;;  %v2326_v55 = vadd.f32 %v1801_v52, %v2312_v46 }
 0x101   : > { %v574_v56 = vpop.f32.mrf.mxu0 }
 0x102   : > { %v668_v57 = vmul.f32 0.044715, %v652_v53  ;;  %v650_v58 = vmul.f32 %v634_v54, %v2320_v51  ;;  %v637_v59 = vmul.f32 %v2326_v55, %v2326_v55  ;;  %v2332_v60 = vadd.f32 %v2312_v46, %v574_v56 }
 0x103   : > { %v1804_v61 = vpop.f32.mrf.mxu0 }
 0x104   : > { %v684_v62 = vadd.f32 %v668_v57, %v2315_v48  ;;  %v666_v63 = vmul.f32 0.044715, %v650_v58  ;;  %v653_v0 = vmul.f32 %v637_v59, %v2326_v55  ;;  %v635_v1 = vmul.f32 %v2332_v60, %v2332_v60 }
 0x105   : > { %v2339_v2 = vadd.f32 %v1804_v61, %v2312_v46  ;;  %v587_v3 = vpop.f32.mrf.mxu0 }
 0x106   : > { %v700_v4 = vmul.f32 0.7978846, %v684_v62  ;;  %v682_v5 = vadd.f32 %v666_v63, %v2320_v51  ;;  %v669_v6 = vmul.f32 0.044715, %v653_v0  ;;  %v651_v7 = vmul.f32 %v635_v1, %v2332_v60 }
 0x107   : > { %v640_v8 = vmul.f32 %v2339_v2, %v2339_v2  ;;  %v2346_v9 = vadd.f32 %v2312_v46, %v587_v3  ;;  %v1805_v10 = vpop.f32.mrf.mxu0 }
 0x108   : > { %2010 = vtanh.f32 %v700_v4  ;;  %v698_v11 = vmul.f32 0.7978846, %v682_v5  ;;  %v685_v12 = vadd.f32 %v669_v6, %v2326_v55  ;;  %v667_v13 = vmul.f32 0.044715, %v651_v7 }
 0x109   : > { %v656_v14 = vmul.f32 %v640_v8, %v2339_v2  ;;  %v638_v15 = vmul.f32 %v2346_v9, %v2346_v9  ;;  %v2353_v16 = vadd.f32 %v1805_v10, %v2312_v46  ;;  %v590_v17 = vpop.f32.mrf.mxu0 }
 0x10a   : > { %v701_v18 = vmul.f32 0.7978846, %v685_v12  ;;  %v683_v19 = vadd.f32 %v667_v13, %v2332_v60  ;;  %v2357_v20 = vadd.f32 %v2312_v46, %v590_v17  ;;  %2012 = vtanh.f32 %v698_v11 }
 0x10b   : > { %v672_v21 = vmul.f32 0.044715, %v656_v14  ;;  %v654_v22 = vmul.f32 %v638_v15, %v2346_v9  ;;  %v641_v23 = vmul.f32 %v2353_v16, %v2353_v16  ;;  %v1808_v24 = vpop.f32.mrf.mxu0 }
 0x10c   : > { %v699_v25 = vmul.f32 0.7978846, %v683_v19  ;;  %v639_v26 = vmul.f32 %v2357_v20, %v2357_v20  ;;  %v2365_v27 = vadd.f32 %v1808_v24, %v2312_v46  ;;  %2014 = vtanh.f32 %v701_v18 }
 0x10d   : > { %v688_v28 = vadd.f32 %v672_v21, %v2339_v2  ;;  %v670_v29 = vmul.f32 0.044715, %v654_v22  ;;  %v657_v30 = vmul.f32 %v641_v23, %v2353_v16  ;;  %v603_v31 = vpop.f32.mrf.mxu0 }
 0x10e   : > { %v655_v32 = vmul.f32 %v639_v26, %v2357_v20  ;;  %v644_v33 = vmul.f32 %v2365_v27, %v2365_v27  ;;  %v2373_v34 = vadd.f32 %v2312_v46, %v603_v31  ;;  %2016 = vtanh.f32 %v699_v25 }
 0x10f   : > { %v704_v35 = vmul.f32 0.7978846, %v688_v28  ;;  %v686_v36 = vadd.f32 %v670_v29, %v2346_v9  ;;  %v673_v37 = vmul.f32 0.044715, %v657_v30  ;;  %v1809_v38 = vpop.f32.mrf.mxu0 }
 0x110   : > { %v671_v39 = vmul.f32 0.044715, %v655_v32  ;;  %v660_v40 = vmul.f32 %v644_v33, %v2365_v27  ;;  %v642_v41 = vmul.f32 %v2373_v34, %v2373_v34  ;;  %v2380_v42 = vadd.f32 %v1809_v38, %v2312_v46 }
 0x111   : > { %2018 = vtanh.f32 %v704_v35  ;;  %v702_v43 = vmul.f32 0.7978846, %v686_v36  ;;  %v689_v44 = vadd.f32 %v673_v37, %v2353_v16  ;;  %v606_v47 = vpop.f32.mrf.mxu0 }
 0x112   : > { %v687_v49 = vadd.f32 %v671_v39, %v2357_v20  ;;  %v676_v50 = vmul.f32 0.044715, %v660_v40  ;;  %v658_v52 = vmul.f32 %v642_v41, %v2373_v34  ;;  %v645_v53 = vmul.f32 %v2380_v42, %v2380_v42 }
 0x113   : > { %2020 = vtanh.f32 %v702_v43  ;;  %v705_v54 = vmul.f32 0.7978846, %v689_v44  ;;  %v2388_v56 = vadd.f32 %v2312_v46, %v606_v47  ;;  %v1812_v57 = vpop.f32.mrf.mxu0 }
 0x114   : > { %v703_v58 = vmul.f32 0.7978846, %v687_v49  ;;  %v692_v59 = vadd.f32 %v676_v50, %v2365_v27  ;;  %v674_v61 = vmul.f32 0.044715, %v658_v52  ;;  %v661_v62 = vmul.f32 %v645_v53, %v2380_v42 }
 0x115   : > { %v2011_v63 = vpop.eup %2010  ;;  %2022 = vtanh.f32 %v705_v54  ;;  %v643_v0 = vmul.f32 %v2388_v56, %v2388_v56  ;;  %v2395_v1 = vadd.f32 %v1812_v57, %v2312_v46  ;;  %v619_v3 = vpop.f32.mrf.mxu0 }
 0x116   : > { %2024 = vtanh.f32 %v703_v58  ;;  %v708_v4 = vmul.f32 0.7978846, %v692_v59  ;;  %v690_v5 = vadd.f32 %v674_v61, %v2373_v34  ;;  %v677_v6 = vmul.f32 0.044715, %v661_v62 }
 0x117   : > { %v2013_v7 = vpop.eup %2012  ;;  %v659_v8 = vmul.f32 %v643_v0, %v2388_v56  ;;  %v648_v10 = vmul.f32 %v2395_v1, %v2395_v1  ;;  %v2402_v11 = vadd.f32 %v2312_v46, %v619_v3  ;;  %v1813_v12 = vpop.f32.mrf.mxu0  ;;  %v732_v13 = vadd.f32 1.0, %v2011_v63 }
 0x118   : > { %2026 = vtanh.f32 %v708_v4  ;;  %v706_v14 = vmul.f32 0.7978846, %v690_v5  ;;  %v693_v15 = vadd.f32 %v677_v6, %v2380_v42  ;;  %v2406_v17 = vadd.f32 %v1813_v12, %v2312_v46 }
 0x119   : > { %v675_v18 = vmul.f32 0.044715, %v659_v8  ;;  %v664_v19 = vmul.f32 %v648_v10, %v2395_v1  ;;  %v646_v21 = vmul.f32 %v2402_v11, %v2402_v11  ;;  %v622_v22 = vpop.f32.mrf.mxu0  ;;  %v730_v23 = vadd.f32 1.0, %v2013_v7  ;;  %v2015_v24 = vpop.eup %2014 }
 0x11a   : > { %2028 = vtanh.f32 %v706_v14  ;;  %v709_v25 = vmul.f32 0.7978846, %v693_v15  ;;  %v649_v26 = vmul.f32 %v2406_v17, %v2406_v17  ;;  %v2414_v28 = vadd.f32 %v2312_v46, %v622_v22  ;;  %v2003_v22 = vld [vmem:[%s2547_s4 + $0x30] sm:$0xff]  }
 0x11b   : > { %v2017_v29 = vpop.eup %2016  ;;  %v691_v30 = vadd.f32 %v675_v18, %v2388_v56  ;;  %v680_v31 = vmul.f32 0.044715, %v664_v19  ;;  %v662_v32 = vmul.f32 %v646_v21, %v2402_v11  ;;  %v746_v33 = vmul.f32 0.5, %v730_v23 }
 0x11c   : > { %2030 = vtanh.f32 %v709_v25  ;;  %v665_v35 = vmul.f32 %v649_v26, %v2406_v17  ;;  %v647_v36 = vmul.f32 %v2414_v28, %v2414_v28  ;;  %v731_v37 = vadd.f32 1.0, %v2017_v29 }
 0x11d   : > { %v707_v38 = vmul.f32 0.7978846, %v691_v30  ;;  %v696_v39 = vadd.f32 %v680_v31, %v2395_v1  ;;  %v678_v40 = vmul.f32 0.044715, %v662_v32  ;;  %v762_v46 = vmul.f32 %v746_v33, %v2320_v51 }
 0x11e   : > { %v2019_v41 = vpop.eup %2018  ;;  %v681_v43 = vmul.f32 0.044715, %v665_v35  ;;  %v663_v44 = vmul.f32 %v647_v36, %v2414_v28  ;;  %v747_v47 = vmul.f32 0.5, %v731_v37  ;;  %v733_v49 = vadd.f32 1.0, %v2015_v24  ;;  %v2004_v35 = vld [vmem:[%s2547_s4 + $0x28] sm:$0xff]  }
 0x11f   : > { %2032 = vtanh.f32 %v707_v38  ;;  %v712_v50 = vmul.f32 0.7978846, %v696_v39  ;;  %v694_v52 = vadd.f32 %v678_v40, %v2402_v11  ;;  %v748_v53 = vmul.f32 0.5, %v732_v13  ;;  %v2005_v40 = vld [vmem:[%s2547_s4 + $0x20] sm:$0xff]  }
 0x120   : > { %v2021_v54 = vpop.eup %2020  ;;  %v697_v57 = vadd.f32 %v681_v43, %v2406_v17  ;;  %v679_v58 = vmul.f32 0.044715, %v663_v44  ;;  %v763_v59 = vmul.f32 %v747_v47, %v2332_v60  ;;  %v749_v61 = vmul.f32 0.5, %v733_v49  ;;  %v2002_v60 = vld [vmem:[%s2547_s4 + $0x38] sm:$0xff]  }
 0x121   : > { %2034 = vtanh.f32 %v712_v50  ;;  %v710_v51 = vmul.f32 0.7978846, %v694_v52  ;;  %v764_v62 = vmul.f32 %v748_v53, %v2315_v48  ;;  %v734_v63 = vadd.f32 1.0, %v2021_v54 }
 0x122   : > { %v2023_v0 = vpop.eup %2022  ;;  %v713_v3 = vmul.f32 0.7978846, %v697_v57  ;;  %v695_v4 = vadd.f32 %v679_v58, %v2414_v28  ;;  %v778_v5 = vpack.c.bf16 %v763_v59, %v762_v46  ;;  %v765_v6 = vmul.f32 %v749_v61, %v2326_v55  ;;  %v2006_v58 = vld [vmem:[%s2547_s4 + $0x18] sm:$0xff]  }
 0x123   : > { %v2025_v7 = vpop.eup %2024  ;;  %2036 = vtanh.f32 %v710_v51  ;;  %v750_v8 = vmul.f32 0.5, %v734_v63  ;;  %v736_v10 = vadd.f32 1.0, %v2019_v41  ;;  %v737_v12 = vadd.f32 1.0, %v2023_v0 }
 0x124   : > { %2038 = vtanh.f32 %v713_v3  ;;  %v711_v13 = vmul.f32 0.7978846, %v695_v4  ;;  %1830 = vmatprep.mubr.bf16.mxu1 %v778_v5  ;;  %1862 = vmatprep.mubr.bf16.mxu0 %v778_v5  ;;  %v779_v48 = vpack.c.bf16 %v765_v6, %v764_v62  ;;  %v735_v14 = vadd.f32 1.0, %v2025_v7  ;;  %v2008_v5 = vld [vmem:[%s2547_s4 + $0x8] sm:$0xff]  }
 0x125   : > { %v2027_v15 = vpop.eup %2026  ;;  %v753_v18 = vmul.f32 0.5, %v737_v12  ;;  %v752_v19 = vmul.f32 0.5, %v736_v10  ;;  %v766_v23 = vmul.f32 %v750_v8, %v2346_v9 }
 0x126   : > { %2040 = vtanh.f32 %v711_v13  ;;  %1831 = vmatmul.mubr.bf16.vlgmr.msra.gmra.mxu1 %v779_v48  ;;  %1863 = vmatmul.mubr.bf16.vlgmr.msra.gmra.mxu0 %v779_v48  ;;  %v751_v55 = vmul.f32 0.5, %v735_v14  ;;  %v740_v32 = vadd.f32 1.0, %v2027_v15 }
 0x127   : > { %v2029_v21 = vpop.eup %2028  ;;  %1879 = vmatpush3.bf16.msra.mxu1 %v2002_v60  ;;  %v769_v25 = vmul.f32 %v753_v18, %v2353_v16  ;;  %v768_v31 = vmul.f32 %v752_v19, %v2339_v2 }
 0x128   : > { %v767_v24 = vmul.f32 %v751_v55, %v2357_v20  ;;  %1880 = vmatprep.subr.bf16.mxu1 %v2098_v45  ;;  %v738_v29 = vadd.f32 1.0, %v2029_v21  ;;  %v756_v2 = vmul.f32 0.5, %v740_v32 }
 0x129   : > { %v2031_v26 = vpop.eup %2030  ;;  %v781_v9 = vpack.c.bf16 %v769_v25, %v768_v31 }
 0x12a   : > { %v780_v30 = vpack.c.bf16 %v767_v24, %v766_v23  ;;  %v741_v33 = vadd.f32 1.0, %v2031_v26  ;;  %v754_v37 = vmul.f32 0.5, %v738_v29  ;;  %v772_v50 = vmul.f32 %v756_v2, %v2365_v27 }
 0x12b   : > { %1881 = vmatpush3.bf16.msra.mxu1 %v2003_v22 }
 0x12c   : > { %v2033_v36 = vpop.eup %2032  ;;  %1834 = vmatprep.mubr.bf16.mxu1 %v780_v30  ;;  %1866 = vmatprep.mubr.bf16.mxu0 %v780_v30  ;;  %v757_v20 = vmul.f32 0.5, %v741_v33  ;;  %v770_v44 = vmul.f32 %v754_v37, %v2373_v34 }
 0x12d   : > { %v739_v16 = vadd.f32 1.0, %v2033_v36  ;;  %1882 = vmatprep.subr.bf16.mxu1 %v2098_v45 }
 0x12e   : > { %v2035_v38 = vpop.eup %2034  ;;  %1835 = vmatmul.mubr.bf16.gmra.mxu1 %v781_v9  ;;  %1867 = vmatmul.mubr.bf16.gmra.mxu0 %v781_v9  ;;  %v773_v41 = vmul.f32 %v757_v20, %v2380_v42 }
 0x12f   : > { %v755_v39 = vmul.f32 0.5, %v739_v16  ;;  %1883 = vmatpush3.bf16.msra.mxu1 %v2004_v35  ;;  %v744_v52 = vadd.f32 1.0, %v2035_v38 }
 0x130   : > { %v2037_v46 = vpop.eup %2036  ;;  %1884 = vmatprep.subr.bf16.mxu1 %v2098_v45  ;;  %v783_v42 = vpack.c.bf16 %v773_v41, %v772_v50 }
 0x131   : > { %v2039_v43 = vpop.eup %2038  ;;  %v771_v47 = vmul.f32 %v755_v39, %v2388_v56  ;;  %v742_v49 = vadd.f32 1.0, %v2037_v46  ;;  %v760_v34 = vmul.f32 0.5, %v744_v52  ;;  %v2007_v56 = vld [vmem:[%s2547_s4 + $0x10] sm:$0xff]  }
 0x132   : > { %v745_v53 = vadd.f32 1.0, %v2039_v43 }
 0x133   : > { %v2041_v54 = vpop.eup %2040  ;;  %v782_v57 = vpack.c.bf16 %v771_v47, %v770_v44  ;;  %1885 = vmatpush3.bf16.msra.mxu1 %v2005_v40  ;;  %v758_v61 = vmul.f32 0.5, %v742_v49  ;;  %v776_v4 = vmul.f32 %v760_v34, %v2395_v1  ;;  %v2480_v1 = vld [vmem:[%s2544_s1] sm:$0x3] }
 0x134   : > { %v743_v59 = vadd.f32 1.0, %v2041_v54  ;;  %v761_v51 = vmul.f32 0.5, %v745_v53  ;;  %1886 = vmatprep.subr.bf16.mxu1 %v2098_v45 }
 0x135   : > { %1838 = vmatprep.mubr.bf16.mxu1 %v782_v57  ;;  %1870 = vmatprep.mubr.bf16.mxu0 %v782_v57  ;;  %v774_v62 = vmul.f32 %v758_v61, %v2402_v11  ;;  %v2009_v11 = vld [vmem:[%s2547_s4] sm:$0xff]  }
 0x136   : > { %1839 = vmatmul.mubr.bf16.gmra.mxu1 %v783_v42  ;;  %1871 = vmatmul.mubr.bf16.gmra.mxu0 %v783_v42  ;;  %v759_v27 = vmul.f32 0.5, %v743_v59  ;;  %v777_v0 = vmul.f32 %v761_v51, %v2406_v17 }
 0x137   : > { %1887 = vmatpush3.bf16.msra.mxu1 %v2006_v58 }
 0x138   : > { %v775_v63 = vmul.f32 %v759_v27, %v2414_v28  ;;  %1888 = vmatprep.subr.bf16.mxu1 %v2098_v45  ;;  %v785_v6 = vpack.c.bf16 %v777_v0, %v776_v4 }
 0x13a   : > { %v784_v3 = vpack.c.bf16 %v775_v63, %v774_v62 }
 0x13b   : > { %1889 = vmatpush3.bf16.msra.mxu1 %v2007_v56 }
 0x13c   : > { %1842 = vmatprep.mubr.bf16.mxu1 %v784_v3  ;;  %1874 = vmatprep.mubr.bf16.mxu0 %v784_v3 }
 0x13d   : > { %1890 = vmatprep.subr.bf16.mxu1 %v2098_v45 }
 0x13e   : > { %1843 = vmatmul.mubr.bf16.gmra.mxu1 %v785_v6  ;;  %1875 = vmatmul.mubr.bf16.gmra.mxu0 %v785_v6 }
 0x13f   : > { %1891 = vmatpush3.bf16.msra.mxu1 %v2008_v5  ;;  %1894 = vmatprep.mubr.msk.bf16.mxu1 %vm2099_vm1, %v2098_v45 }
 0x140   : > { %1892 = vmatprep.subr.bf16.mxu1 %v2098_v45  ;;  %1906 = vmatprep.mubr.msk.bf16.mxu0 %vm2099_vm1, %v2098_v45 }
 0x143   : > { %1893 = vmatpush3.bf16.msra.mxu1 %v2009_v11 }
 0x144   : > { %1910 = vmatprep.subr.bf16.mxu1 %v2098_v45 }
 0x146   : > { %1895 = vmatmul.mubr.bf16.vlgmr.msra.gmra.mxu1 %v2480_v1 }
 0x147   : > { %1918 = vmatprep.mubr.msk.bf16.mxu1 %vm2099_vm1, %v2098_v45 }
 0x1e6   : > { %v1832_v17 = vpop.f32.mrf.mxu1  ;;  %v2486_v28 = vpop.f32.mrf.mxu0 }
 0x1e8   : > { %v884_v7 = vpop.f32.mrf.mxu1  ;;  %v2488_v10 = vpop.f32.mrf.mxu0 }
 0x1ea   : > { %v1833_v8 = vpop.f32.mrf.mxu1  ;;  %v1865_v13 = vpop.f32.mrf.mxu0 }
 0x1eb   : > { %v1214_v33 = vpack.c.bf16 %v1833_v8, %v1832_v17  ;;  %v1222_v53 = vpack.c.bf16 %v1865_v13, %v2486_v28 }
 0x1ec   : > { %v887_v12 = vpop.f32.mrf.mxu1  ;;  %v1048_v18 = vpop.f32.mrf.mxu0 }
 0x1ed   : > { %v1213_v2 = vpack.c.bf16 %v887_v12, %v884_v7  ;;  %v1221_v58 = vpack.c.bf16 %v1048_v18, %v2488_v10 }
 0x1ee   : > { %v1836_v60 = vpop.f32.mrf.mxu1  ;;  %v1868_v21 = vpop.f32.mrf.mxu0 }
 0x1f0   : > { %v900_v48 = vpop.f32.mrf.mxu1  ;;  %v1061_v25 = vpop.f32.mrf.mxu0 }
 0x1f2   : > { %v1837_v14 = vpop.f32.mrf.mxu1  ;;  %v1869_v30 = vpop.f32.mrf.mxu0 }
 0x1f3   : > { %v1216_v15 = vpack.c.bf16 %v1837_v14, %v1836_v60  ;;  %v1224_v44 = vpack.c.bf16 %v1869_v30, %v1868_v21 }
 0x1f4   : > { %v903_v55 = vpop.f32.mrf.mxu1  ;;  %v1064_v36 = vpop.f32.mrf.mxu0 }
 0x1f5   : > { %1899 = vmatpush3.bf16.xpose.msra.mxu0 %v1216_v15  ;;  %v1215_v24 = vpack.c.bf16 %v903_v55, %v900_v48  ;;  %v1223_v50 = vpack.c.bf16 %v1064_v36, %v1061_v25 }
 0x1f6   : > { %v1840_v19 = vpop.f32.mrf.mxu1  ;;  %1900 = vmatprep.subr.bf16.mxu0 %v2098_v45  ;;  %v1872_v16 = vpop.f32.mrf.mxu0 }
 0x1f8   : > { %v916_v22 = vpop.f32.mrf.mxu1  ;;  %v1077_v40 = vpop.f32.mrf.mxu0 }
 0x1fa   : > { %v1841_v23 = vpop.f32.mrf.mxu1  ;;  %v1873_v41 = vpop.f32.mrf.mxu0 }
 0x1fb   : > { %v1218_v47 = vpack.c.bf16 %v1841_v23, %v1840_v19  ;;  %v1226_v27 = vpack.c.bf16 %v1873_v41, %v1872_v16 }
 0x1fc   : > { %v919_v26 = vpop.f32.mrf.mxu1  ;;  %v1080_v49 = vpop.f32.mrf.mxu0 }
 0x1fd   : > { %1901 = vmatpush3.bf16.xpose.msra.mxu0 %v1215_v24  ;;  %v1217_v54 = vpack.c.bf16 %v919_v26, %v916_v22  ;;  %v1225_v34 = vpack.c.bf16 %v1080_v49, %v1077_v40 }
 0x1fe   : > { %v1844_v29 = vpop.f32.mrf.mxu1  ;;  %1902 = vmatprep.subr.bf16.mxu0 %v2098_v45  ;;  %v1876_v52 = vpop.f32.mrf.mxu0 }
 0x200   : > { %v932_v31 = vpop.f32.mrf.mxu1  ;;  %v1093_v57 = vpop.f32.mrf.mxu0 }
 0x202   : > { %v1845_v32 = vpop.f32.mrf.mxu1  ;;  %v1877_v42 = vpop.f32.mrf.mxu0 }
 0x203   : > { %v1220_v35 = vpack.c.bf16 %v1845_v32, %v1844_v29  ;;  %v1228_v59 = vpack.c.bf16 %v1877_v42, %v1876_v52 }
 0x204   : > { %v935_v9 = vpop.f32.mrf.mxu1  ;;  %v1096_v61 = vpop.f32.mrf.mxu0 }
 0x205   : > { %1903 = vmatpush3.bf16.xpose.msra.mxu0 %v1214_v33  ;;  %1911 = vmatpush3.bf16.xpose.msra.mxu1 %v1220_v35  ;;  %v1219_v39 = vpack.c.bf16 %v935_v9, %v932_v31  ;;  %v1227_v51 = vpack.c.bf16 %v1096_v61, %v1093_v57  ;;  %v1424_v31 = vunpack.c.l.bf16 %v2480_v1 }
 0x206   : > { %1904 = vmatprep.subr.bf16.mxu0 %v2098_v45  ;;  %1912 = vmatprep.subr.bf16.mxu1 %v2098_v45  ;;  %v1207_v20 = vpop.f32.mrf.mxu1 }
 0x207   : > { %v1229_v43 = vpack.c.bf16 %v1207_v20, %v1207_v20 }
 0x208   : > { %v1896_v37 = vpop.f32.mrf.mxu1 }
 0x20a   : > { %v1210_v38 = vpop.f32.mrf.mxu1 }
 0x20c   : > { %v1897_v46 = vpop.f32.mrf.mxu1 }
 0x20d   : > { %1905 = vmatpush3.bf16.xpose.msra.mxu0 %v1213_v2  ;;  %1913 = vmatpush3.bf16.xpose.msra.mxu1 %v1219_v39 }
 0x20e   : > { %1914 = vmatprep.subr.bf16.mxu1 %v2098_v45  ;;  %1922 = vmatprep.subr.bf16.mxu0 %v2098_v45 }
 0x214   : > { %1907 = vmatmul.mubr.bf16.vlgmr.msra.gmra.mxu0 %v1229_v43 }
 0x215   : > { %1915 = vmatpush3.bf16.xpose.msra.mxu1 %v1218_v47  ;;  %1923 = vmatpush3.bf16.msra.mxu0 %v1224_v44 }
 0x216   : > { %1924 = vmatprep.subr.bf16.mxu0 %v2098_v45  ;;  %1916 = vmatprep.subr.bf16.mxu1 %v2098_v45 }
 0x217   : > { %1930 = vmatprep.mubr.msk.bf16.mxu0 %vm2099_vm1, %v2098_v45 }
 0x219   : > { %1925 = vmatpush3.bf16.msra.mxu0 %v1223_v50 }
 0x21a   : > { %1926 = vmatprep.subr.bf16.mxu0 %v2098_v45 }
 0x21d   : > { %1917 = vmatpush3.bf16.xpose.msra.mxu1 %v1217_v54  ;;  %1927 = vmatpush3.bf16.msra.mxu0 %v1222_v53 }
 0x21e   : > { %1928 = vmatprep.subr.bf16.mxu0 %v2098_v45  ;;  %1934 = vmatprep.subr.bf16.mxu1 %v2098_v45 }
 0x221   : > { %1929 = vmatpush3.bf16.msra.mxu0 %v1221_v58 }
 0x224   : > { %1919 = vmatmul.mubr.bf16.vlgmr.msra.gmra.mxu1 %v1229_v43 }
 0x225   : > { %1935 = vmatpush3.bf16.msra.mxu1 %v1228_v59  ;;  %1942 = vmatprep.mubr.msk.bf16.mxu1 %vm2099_vm1, %v2098_v45 }
 0x226   : > { %1936 = vmatprep.subr.bf16.mxu1 %v2098_v45 }
 0x229   : > { %1937 = vmatpush3.bf16.msra.mxu1 %v1227_v51 }
 0x22a   : > { %1938 = vmatprep.subr.bf16.mxu1 %v2098_v45 }
 0x22d   : > { %1939 = vmatpush3.bf16.msra.mxu1 %v1226_v27 }
 0x22e   : > { %1940 = vmatprep.subr.bf16.mxu1 %v2098_v45 }
 0x231   : > { %1941 = vmatpush3.bf16.msra.mxu1 %v1225_v34 }
 0x2d4   : > { %v1264_v56 = vpop.f32.mrf.mxu0 }
 0x2d5   : > { %v1310_v62 = vmul.f32 0.088388346, %v1264_v56 }
 0x2d6   : > { %v1908_v63 = vpop.f32.mrf.mxu0 }
 0x2d7   : > { %v1313_v0 = vsel %vm1312_vm2, %v1310_v62, -inf }
 0x2d8   : > { %1314 = vmax.xlane.f32.xlu0 %v1313_v0  ;;  %v1267_v3 = vpop.f32.mrf.mxu0 }
 0x2da   : > { %v1909_v4 = vpop.f32.mrf.mxu0 }
 0x2e4   : > { %v1304_v5 = vpop.f32.mrf.mxu1 }
 0x2e5   : > { %v1311_v6 = vmul.f32 0.088388346, %v1304_v5 }
 0x2e6   : > { %v1920_v11 = vpop.f32.mrf.mxu1 }
 0x2e7   : > { %v1316_v17 = vsel %vm1312_vm2, %v1311_v6, -inf }
 0x2e8   : > { %1317 = vmax.xlane.f32.xlu0 %v1316_v17  ;;  %v1307_v28 = vpop.f32.mrf.mxu1 }
 0x2ea   : > { %v1921_v7 = vpop.f32.mrf.mxu1 }
 0x361   : > { %v1315_v45 = vpop.xlane.xlu0 %1314 }
 0x362   : > { %v1319_v8 = vsub.f32 %v1310_v62, %v1315_v45 }
 0x364   : > { %v1321_v10 = vmul.f32 1.442695, %v1319_v8 }
 0x366   : > { %2042 = vpow2.f32 %v1321_v10 }
 0x371   : > { %v1318_v12 = vpop.xlane.xlu0 %1317 }
 0x372   : > { %v1320_v60 = vsub.f32 %v1311_v6, %v1318_v12 }
 0x373   : > { %v2043_v13 = vpop.eup %2042 }
 0x374   : > { %v1323_v48 = vmul.f32 1.442695, %v1320_v60  ;;  %v1325_v14 = vsel %vm1312_vm2, %v2043_v13, 0.0  ;;  %v1331_v15 = vpack.c.bf16 %v2043_v13, %v2043_v13 }
 0x375   : > { %1326 = vadd.xlane.f32.xlu1 %v1325_v14 }
 0x376   : > { %2044 = vpow2.f32 %v1323_v48  ;;  %1931 = vmatmul.mubr.msk.bf16.vlgmr.msra.gmra.mxu0 %vm1333_vm3, %v1331_v15 }
 0x383   : > { %v2045_v18 = vpop.eup %2044 }
 0x384   : > { %v1328_v55 = vsel %vm1312_vm2, %v2045_v18, 0.0  ;;  %v1332_v19 = vpack.c.bf16 %v2045_v18, %v2045_v18 }
 0x385   : > { %1329 = vadd.xlane.f32.xlu1 %v1328_v55 }
 0x386   : > { %1943 = vmatmul.mubr.msk.bf16.vlgmr.msra.gmra.mxu1 %vm1333_vm3, %v1332_v19 }
 0x3fe   : > { %v1327_v21 = vpop.xlane.xlu1 %1326 }
 0x3ff   : > { %2046 = vrcp.f32 %v1327_v21 }
 0x40c   : > { %v2047_v29 = vpop.eup %2046 }
 0x40e   : > { %v1330_v22 = vpop.xlane.xlu1 %1329 }
 0x40f   : > { %2048 = vrcp.f32 %v1330_v22 }
 0x41c   : > { %v2049_v32 = vpop.eup %2048 }
 0x436   : > { %v1371_v23 = vpop.f32.mrf.mxu0 }
 0x437   : > { %v1422_v30 = vmul.f32 %v2047_v29, %v1371_v23 }
 0x438   : > { %v1932_v24 = vpop.f32.mrf.mxu0 }
 0x439   : > { %v1425_v9 = vadd.f32 %v1424_v31, %v1422_v30 }
 0x43a   : > { %v1374_v25 = vpop.f32.mrf.mxu0 }
 0x43c   : > { %v1933_v26 = vpop.f32.mrf.mxu0 }
 0x446   : > { %v1414_v33 = vpop.f32.mrf.mxu1 }
 0x447   : > { %v1423_v35 = vmul.f32 %v2049_v32, %v1414_v33 }
 0x448   : > { %v1944_v36 = vpop.f32.mrf.mxu1 }
 0x449   : > { %v1426_v20 = vadd.f32 %v1424_v31, %v1423_v35 }
 0x44a   : > { %v1417_v16 = vpop.f32.mrf.mxu1 }
 0x44b   : > { %v1429_v37 = vcombine.low %v1425_v9, %v1426_v20 }
 0x44c   : > { %v1945_v38 = vpop.f32.mrf.mxu1 }
 0x44d   : > { %v1431_v2 = vpack.c.bf16 %v1429_v37, %v1429_v37 }
 0x44f   : > { %1432 = vst [vmem:[#allocation2] sm:$0xf] %v1431_v2 }
 0x450 PF: > { %v2050_v1 = vld [vmem:[%s2208_s10 + $0x74] ss:$8 sps:$4 sm:$0xff]   ;;  %v2052_v39 = vld [vmem:[%s2208_s10 + $0x70] ss:$8 sps:$4 sm:$0xff]   ;;  %v2100_v40 = vmov 0  }
 0x451   : > { %1562 = vmatprep.mubr.bf16.mxu0 %v2100_v40  ;;  %1530 = vmatprep.subr.bf16.mxu0 %v2050_v1  ;;  %v2053_v46 = vld [vmem:[%s2208_s10 + $0x64] ss:$8 sps:$4 sm:$0xff]   ;;  %v2055_v41 = vld [vmem:[%s2208_s10 + $0x60] ss:$8 sps:$4 sm:$0xff]   ;;  %v2056_v43 = vld [vmem:[%s2208_s10 + $0x54] ss:$8 sps:$4 sm:$0xff]  }
 0x452   : > { %1531 = vmatpush1.bf16.msra.mxu0 %v2052_v39  ;;  %v2058_v44 = vld [vmem:[%s2208_s10 + $0x50] ss:$8 sps:$4 sm:$0xff]   ;;  %v2059_v47 = vld [vmem:[%s2208_s10 + $0x44] ss:$8 sps:$4 sm:$0xff]   ;;  %v2061_v49 = vld [vmem:[%s2208_s10 + $0x40] ss:$8 sps:$4 sm:$0xff]  }
 0x453   : > { %1532 = vmatprep.subr.bf16.mxu0 %v2053_v46  ;;  %v2062_v50 = vld [vmem:[%s2208_s10 + $0x34] ss:$8 sps:$4 sm:$0xff]   ;;  %v2064_v52 = vld [vmem:[%s2208_s10 + $0x30] ss:$8 sps:$4 sm:$0xff]   ;;  %v2065_v53 = vld [vmem:[%s2208_s10 + $0x24] ss:$8 sps:$4 sm:$0xff]  }
 0x454   : > { %v2067_v54 = vld [vmem:[%s2208_s10 + $0x20] ss:$8 sps:$4 sm:$0xff]   ;;  %v2068_v57 = vld [vmem:[%s2208_s10 + $0x14] ss:$8 sps:$4 sm:$0xff]   ;;  %v2070_v58 = vld [vmem:[%s2208_s10 + $0x10] ss:$8 sps:$4 sm:$0xff]  }
 0x455   : > { %v2071_v42 = vld [vmem:[%s2208_s10 + $0x4] ss:$8 sps:$4 sm:$0xff]   ;;  %v2073_v59 = vld [vmem:[%s2208_s10] ss:$8 sps:$4 sm:$0xff]  }
 0x456   : > { %1533 = vmatpush1.bf16.msra.mxu0 %v2055_v41  ;;  %v1433_v61 = vld [vmem:[#allocation2] sm:$0xf] }
 0x457   : > { %1534 = vmatprep.subr.bf16.mxu0 %v2056_v43 }
 0x45a   : > { %1535 = vmatpush1.bf16.msra.mxu0 %v2058_v44 }
 0x45b   : > { %1536 = vmatprep.subr.bf16.mxu0 %v2059_v47 }
 0x45e   : > { %1537 = vmatpush1.bf16.msra.mxu0 %v2061_v49 }
 0x45f   : > { %1538 = vmatprep.subr.bf16.mxu0 %v2062_v50 }
 0x462   : > { %1539 = vmatpush1.bf16.msra.mxu0 %v2064_v52 }
 0x463   : > { %1540 = vmatprep.subr.bf16.mxu0 %v2065_v53 }
 0x466   : > { %1541 = vmatpush1.bf16.msra.mxu0 %v2067_v54 }
 0x467   : > { %1542 = vmatprep.subr.bf16.mxu0 %v2068_v57 }
 0x46a   : > { %1543 = vmatpush1.bf16.msra.mxu0 %v2070_v58 }
 0x46b   : > { %1544 = vmatprep.subr.bf16.mxu0 %v2071_v42 }
 0x46e   : > { %1545 = vmatpush1.bf16.msra.mxu0 %v2073_v59 }
 0x471   : > { %1563 = vmatmul.mubr.bf16.vlgmr.msra.gmra.mxu0 %v1433_v61 }
 0x531   : > { %v1564_v51 = vpop.f32.mrf.mxu0 }
 0x532   : > { %1571 = vst [vmem:[%s2206_s26] sm:$0xff] %v1564_v51 }
 0x533   : > { %v1566_v27 = vpop.f32.mrf.mxu0 }
 0x534   : > { %1572 = vst [vmem:[%s2206_s26 + $0x8] sm:$0xff] %v1566_v27 }
 0x535   : > { %v1568_v34 = vpop.f32.mrf.mxu0 }
 0x537   : > { %v1569_v56 = vpop.f32.mrf.mxu0 }
 0x538 PF: > { %p15_p10 = scmp.ge.s32.totalorder %s2163_s9, 4   ;;  %s2552_s27 = smov %s2092_s28 }
 0x539   : > { %s2553_s28 = smov %s2172_s12  ;;  %s2554_s29 = smov %s2163_s9 }
 0x53a   :  { %17 = sbr.rel (!%p15_p10) target bundleno = 2 (0x2), region = 129 }

</bundles_post_ra>
